<compile_context>
chip_gen: v7x
topology: tpu7x:2x2x1
jax: 0.10.0
libtpu: 0.0.40
codegen_flags: <defaults>
</compile_context>

<pallas_src>
import jax
import jax.numpy as jnp
from jax.experimental import pallas as pl
from jax.experimental.pallas import tpu as pltpu


def mlp_kernel(x_ref, w1_ref, b1_ref, w2_ref, b2_ref, o_ref):
    # First linear (MXU) + bias + ReLU (VPU), all in f32.
    h = jnp.dot(x_ref[...], w1_ref[...], preferred_element_type=jnp.float32)
    h = jnp.maximum(h + b1_ref[...], 0.0)                  # (TM, H) + (1, H)
    # Second linear (MXU) + bias.
    out = jnp.dot(h, w2_ref[...], preferred_element_type=jnp.float32)
    o_ref[...] = (out + b2_ref[...]).astype(o_ref.dtype)   # (TM, N) + (1, N)


def mlp_forward(x, w1, b1, w2, b2, *, block_m=None):
    """x: (B, K) f32; w1: (K, H); b1: (1, H); w2: (H, N); b2: (1, N)."""
    B, K = x.shape
    Kw, H = w1.shape
    Hw, N = w2.shape
    assert Kw == K and Hw == H
    assert b1.shape == (1, H) and b2.shape == (1, N)

    if block_m is None:
        # Small / latency-bound batches: one grid step (grid is a serial loop
        # on v5e/v6e, and splitting tens-of-ns of compute across v7x's two TCs
        # is pure overhead).  Large batches: tile so both TCs get real work and
        # DMAs stay big.
        block_m = B if B <= 1024 else 1024
    if B % block_m != 0:
        block_m = B  # fall back to a single full-batch step
    grid = (B // block_m,)

    flops = 2 * B * (K * H + H * N)
    bytes_accessed = 4 * (x.size + w1.size + b1.size + w2.size + b2.size + B * N)

    return pl.pallas_call(
        mlp_kernel,
        out_shape=jax.ShapeDtypeStruct((B, N), jnp.float32),
        grid=grid,
        in_specs=[
            pl.BlockSpec((block_m, K), lambda i: (i, 0)),  # x tile: pipelined over batch
            pl.BlockSpec((K, H), lambda i: (0, 0)),        # w1: resident in VMEM
            pl.BlockSpec((1, H), lambda i: (0, 0)),        # b1: resident
            pl.BlockSpec((H, N), lambda i: (0, 0)),        # w2: resident
            pl.BlockSpec((1, N), lambda i: (0, 0)),        # b2: resident
        ],
        out_specs=pl.BlockSpec((block_m, N), lambda i: (i, 0)),
        compiler_params=pltpu.CompilerParams(
            dimension_semantics=("parallel",)),
        cost_estimate=pl.CostEstimate(
            flops=flops, transcendentals=0, bytes_accessed=bytes_accessed),
    )(x, w1, b1, w2, b2)


def init_mlp_params(key, input_size, hidden_size=32, output_size=1):
    """Deterministic init mimicking PyTorch Linear default (uniform +/- 1/sqrt(fan_in))."""
    k1, k2, k3, k4 = jax.random.split(key, 4)
    bound1 = 1.0 / jnp.sqrt(input_size)
    bound2 = 1.0 / jnp.sqrt(hidden_size)
    w1 = jax.random.uniform(k1, (input_size, hidden_size), jnp.float32, -bound1, bound1)
    b1 = jax.random.uniform(k2, (1, hidden_size), jnp.float32, -bound1, bound1)
    w2 = jax.random.uniform(k3, (hidden_size, output_size), jnp.float32, -bound2, bound2)
    b2 = jax.random.uniform(k4, (1, output_size), jnp.float32, -bound2, bound2)
    return w1, b1, w2, b2


if __name__ == "__main__":
    # MLP(input_size=16, output_size=1, hidden_size=32, n_layers=1), small batch.
    batch, input_size, hidden_size, output_size = 64, 16, 32, 1

    key = jax.random.PRNGKey(0)
    kx, kp = jax.random.split(key)
    x = jax.random.normal(kx, (batch, input_size), jnp.float32)
    w1, b1, w2, b2 = init_mlp_params(kp, input_size, hidden_size, output_size)

    out = jax.block_until_ready(mlp_forward(x, w1, b1, w2, b2))
    assert out.shape == (batch, output_size)

    # Pure-JAX f32 reference.  Tolerance covers possible bf16-pass MXU rounding
    # in either the kernel or the XLA reference (contractions are only 16/32 long).
    ref = jnp.maximum(x @ w1 + b1, 0.0) @ w2 + b2
    assert jnp.allclose(out, ref, atol=2e-2, rtol=2e-2), float(jnp.max(jnp.abs(out - ref)))

    print("KERNEL_OK")
</pallas_src>

<mosaic_0001>
module attributes {stable_mosaic.version = 11 : i64} {
  func.func @mlp_kernel(%arg0: i32, %arg1: memref<64x16xf32, #tpu.memory_space<vmem>>, %arg2: memref<16x32xf32, #tpu.memory_space<vmem>>, %arg3: memref<1x32xf32, #tpu.memory_space<vmem>>, %arg4: memref<32x1xf32, #tpu.memory_space<vmem>>, %arg5: memref<1x1xf32, #tpu.memory_space<vmem>>, %arg6: memref<64x1xf32, #tpu.memory_space<vmem>>) attributes {dimension_semantics = [#tpu.dimension_semantics<parallel>], iteration_bounds = array<i64: 1>, scalar_prefetch = 0 : i64, scratch_operands = 0 : i64, tpu.core_type = #tpu.core_type<tc>, window_params = [{transform_indices = @transform_0, window_bounds = array<i64: 64, 16>}, {pipeline_mode = #tpu.pipeline_mode<synchronous>, transform_indices = @transform_1, window_bounds = array<i64: 16, 32>}, {pipeline_mode = #tpu.pipeline_mode<synchronous>, transform_indices = @transform_2, window_bounds = array<i64: 1, 32>}, {pipeline_mode = #tpu.pipeline_mode<synchronous>, transform_indices = @transform_3, window_bounds = array<i64: 32, 1>}, {pipeline_mode = #tpu.pipeline_mode<synchronous>, transform_indices = @transform_4, window_bounds = array<i64: 1, 1>}, {transform_indices = @transform_5, window_bounds = array<i64: 64, 1>}]} {
    %c0 = arith.constant 0 : index
    %c0_0 = arith.constant 0 : index
    %0 = vector.load %arg1[%c0, %c0_0] : memref<64x16xf32, #tpu.memory_space<vmem>>, vector<64x16xf32>
    %c0_1 = arith.constant 0 : index
    %c0_2 = arith.constant 0 : index
    %1 = vector.load %arg2[%c0_1, %c0_2] : memref<16x32xf32, #tpu.memory_space<vmem>>, vector<16x32xf32>
    %cst = arith.constant dense<0.000000e+00> : vector<64x32xf32>
    %2 = tpu.matmul %0, %1, %cst {dimension_numbers = #tpu.dot_dimension_numbers<[1], [0], [0], [1], [0, 0, 1, 1], [], []>} : vector<64x16xf32>, vector<16x32xf32>, vector<64x32xf32> -> vector<64x32xf32>
    %c0_3 = arith.constant 0 : index
    %c0_4 = arith.constant 0 : index
    %3 = vector.load %arg3[%c0_3, %c0_4] : memref<1x32xf32, #tpu.memory_space<vmem>>, vector<1x32xf32>
    %4 = vector.broadcast %3 : vector<1x32xf32> to vector<64x32xf32>
    %5 = arith.addf %2, %4 : vector<64x32xf32>
    %cst_5 = arith.constant 0.000000e+00 : f32
    %6 = vector.broadcast %cst_5 : f32 to vector<64x32xf32>
    %7 = arith.maximumf %5, %6 : vector<64x32xf32>
    %c0_6 = arith.constant 0 : index
    %c0_7 = arith.constant 0 : index
    %8 = vector.load %arg4[%c0_6, %c0_7] : memref<32x1xf32, #tpu.memory_space<vmem>>, vector<32x1xf32>
    %cst_8 = arith.constant dense<0.000000e+00> : vector<64x1xf32>
    %9 = tpu.matmul %7, %8, %cst_8 {dimension_numbers = #tpu.dot_dimension_numbers<[1], [0], [0], [1], [0, 0, 1, 1], [], []>} : vector<64x32xf32>, vector<32x1xf32>, vector<64x1xf32> -> vector<64x1xf32>
    %c0_9 = arith.constant 0 : index
    %c0_10 = arith.constant 0 : index
    %10 = vector.load %arg5[%c0_9, %c0_10] : memref<1x1xf32, #tpu.memory_space<vmem>>, vector<1x1xf32>
    %11 = vector.broadcast %10 : vector<1x1xf32> to vector<64x1xf32>
    %12 = arith.addf %9, %11 : vector<64x1xf32>
    %c0_11 = arith.constant 0 : index
    %c0_12 = arith.constant 0 : index
    %13 = vector.load %arg6[%c0_11, %c0_12] : memref<64x1xf32, #tpu.memory_space<vmem>>, vector<64x1xf32>
    tpu.vector_store %arg6[%c0_11, %c0_12], %12 {strides = array<i32>} : memref<64x1xf32, #tpu.memory_space<vmem>>, vector<64x1xf32>,
    return
  }
  func.func @transform_0(%arg0: i32) -> (i32, i32) {
    %c0_i32 = arith.constant 0 : i32
    %c0_i32_0 = arith.constant 0 : i32
    return %arg0, %c0_i32 : i32, i32
  }
  func.func @transform_1(%arg0: i32) -> (i32, i32) {
    %c0_i32 = arith.constant 0 : i32
    %c0_i32_0 = arith.constant 0 : i32
    %c0_i32_1 = arith.constant 0 : i32
    return %c0_i32, %c0_i32_0 : i32, i32
  }
  func.func @transform_2(%arg0: i32) -> (i32, i32) {
    %c0_i32 = arith.constant 0 : i32
    %c0_i32_0 = arith.constant 0 : i32
    %c0_i32_1 = arith.constant 0 : i32
    return %c0_i32, %c0_i32_0 : i32, i32
  }
  func.func @transform_3(%arg0: i32) -> (i32, i32) {
    %c0_i32 = arith.constant 0 : i32
    %c0_i32_0 = arith.constant 0 : i32
    %c0_i32_1 = arith.constant 0 : i32
    return %c0_i32, %c0_i32_0 : i32, i32
  }
  func.func @transform_4(%arg0: i32) -> (i32, i32) {
    %c0_i32 = arith.constant 0 : i32
    %c0_i32_0 = arith.constant 0 : i32
    %c0_i32_1 = arith.constant 0 : i32
    return %c0_i32, %c0_i32_0 : i32, i32
  }
  func.func @transform_5(%arg0: i32) -> (i32, i32) {
    %c0_i32 = arith.constant 0 : i32
    %c0_i32_0 = arith.constant 0 : i32
    return %arg0, %c0_i32 : i32, i32
  }
}

</mosaic_0001>

<bundles_post_ra>
// kernel: tpu_custom_call.1
= control target key start
LH: loop header
LB: loop body
LE: loop exit
PB: predicated region body
PF: predicated region fallthrough
CT: control target
= control target key end

     0   :  { %vm39_vm0 = vcmask 130048   ;;  %vm188_vm1 = vcmask 261120   ;;  %vm318_vm2 = vcmask 7168   ;;  %s545_s1 = inlined_call_operand.vmem [shape: f32[16,32], index: 1, kind: input, shape index: {}]   ;;  %s546_s0 = inlined_call_operand.vmem [shape: f32[64,16], index: 0, kind: input, shape index: {}]   ;;  %s547_s3 = inlined_call_operand.vmem [shape: f32[32,1], index: 3, kind: input, shape index: {}]   ;;  %s548_s4 = inlined_call_operand.<no memory space> [shape: f32[1,1], index: 4, kind: input, shape index: {}]   ;;  %s549_s2 = inlined_call_operand.vmem [shape: f32[1,32], index: 2, kind: input, shape index: {}]   ;;  %s550_s5 = inlined_call_operand.vmem [shape: f32[64,1], index: 5, kind: output, shape index: {}]  }
   0x1   :  { %v30_v0 = vld [vmem:[%s545_s1] sm:$0xff]  ;;  %v31_v1 = vld [vmem:[%s545_s1 + $0x8] sm:$0xff]  ;;  %v24_v8 = vld [vmem:[%s546_s0 + $0x10] sm:$0xff]  ;;  %v10_v17 = vstv %s548_s4 }
   0x2   :  { %v22_v2 = vld [vmem:[%s546_s0] sm:$0xff]  ;;  %v407_v3 = vpack.c.bf16 %v31_v1, %v30_v0  ;;  %v178_v5 = vld [vmem:[%s547_s3 + $0x8] sm:$0xff]  ;;  %v25_v9 = vld [vmem:[%s546_s0 + $0x18] sm:$0xff]  ;;  %11 = vst [vmem:[#allocation2] sm:$0x1] %v10_v17 }
   0x3   :  { %375 = vmatprep.mubr.msk.f32.mxu0 %vm39_vm0, %v22_v2  ;;  %v177_v4 = vld [vmem:[%s547_s3] sm:$0xff]  ;;  %v23_v6 = vld [vmem:[%s546_s0 + $0x8] sm:$0xff]  ;;  %v28_v12 = vld [vmem:[%s546_s0 + $0x30] sm:$0xff] }
   0x4   :  { %408 = vmatprep.subr.bf16.mxu0 %v407_v3  ;;  %v411_v7 = vpack.c.bf16 %v178_v5, %v177_v4  ;;  %v26_v10 = vld [vmem:[%s546_s0 + $0x20] sm:$0xff]  ;;  %v27_v11 = vld [vmem:[%s546_s0 + $0x28] sm:$0xff]  ;;  %v29_v13 = vld [vmem:[%s546_s0 + $0x38] sm:$0xff] }
   0x5   :  { %410 = vmatpush3.bf16.msra.mxu0 %v407_v3  ;;  %v179_v14 = vld [vmem:[%s547_s3 + $0x10] sm:$0xff]  ;;  %v180_v15 = vld [vmem:[%s547_s3 + $0x18] sm:$0xff]  ;;  %v331_v18 = vld [vmem:[%s549_s2] ss:$0 sm:$0xff] }
   0x6   :  { %412 = vmatprep.subr.bf16.mxu1 %v411_v7  ;;  %v415_v16 = vpack.c.bf16 %v180_v15, %v179_v14 }
   0x7   :  { %414 = vmatpush3.bf16.msra.mxu1 %v411_v7 }
   0x8   :  { %376 = vmatmul.mubr.msk.f32.vlgmr.msra.gmra.mrb[0].mxu0 %vm39_vm0, %v23_v6  ;;  %416 = vmatprep.subr.bf16.mxu1 %v415_v16 }
   0x9   :  { %378 = vmatprep.mubr.msk.f32.mxu0 %vm39_vm0, %v24_v8  ;;  %v340_v43 = vld [vmem:[#allocation2] ss:$0 sm:$0xff] }
   0xb   :  { %418 = vmatpush3.bf16.msra.mxu1 %v415_v16 }
   0xc   :  { %379 = vmatmul.mubr.msk.f32.gmra.mrb[2].mxu0 %vm39_vm0, %v25_v9 }
   0xd   :  { %381 = vmatprep.mubr.msk.f32.mxu0 %vm39_vm0, %v26_v10 }
  0x10   :  { %382 = vmatmul.mubr.msk.f32.gmra.mrb[4].mxu0 %vm39_vm0, %v27_v11 }
  0x11   :  { %384 = vmatprep.mubr.msk.f32.mxu0 %vm39_vm0, %v28_v12 }
  0x14   :  { %385 = vmatmul.mubr.msk.f32.gmra.mrb[6].mxu0 %vm39_vm0, %v29_v13 }
  0xdb   :  { %v377_v19 = vpop.f32.mrb[0].mxu0 }
  0xdc   :  { %v136_v20 = vadd.f32 %v377_v19, %v331_v18  ;;  %v130_v21 = vpop.f32.mrb[1].mxu0 }
  0xdd   :  { %v131_v22 = vadd.f32 %v331_v18, %v130_v21 }
  0xde   :  { %v170_v25 = vmax.f32 %v136_v20, 0.0 }
  0xdf   :  { %v169_v23 = vmax.f32 %v131_v22, 0.0  ;;  %v380_v24 = vpop.f32.mrb[2].mxu0 }
  0xe0   :  { %v146_v26 = vadd.f32 %v380_v24, %v331_v18  ;;  %v140_v27 = vpop.f32.mrb[3].mxu0 }
  0xe1   :  { %v141_v28 = vadd.f32 %v331_v18, %v140_v27  ;;  %395 = vmatprep.mubr.msk.f32.mxu1 %vm188_vm1, %v169_v23 }
  0xe2   :  { %396 = vmatmul.mubr.msk.f32.vlgmr.msra.gmra.mrb[0].mxu1 %vm188_vm1, %v170_v25  ;;  %v172_v31 = vmax.f32 %v146_v26, 0.0 }
  0xe3   :  { %v171_v29 = vmax.f32 %v141_v28, 0.0  ;;  %v383_v30 = vpop.f32.mrb[4].mxu0 }
  0xe4   :  { %v156_v32 = vadd.f32 %v383_v30, %v331_v18  ;;  %v150_v33 = vpop.f32.mrb[5].mxu0 }
  0xe5   :  { %v151_v34 = vadd.f32 %v331_v18, %v150_v33  ;;  %398 = vmatprep.mubr.msk.f32.mxu1 %vm188_vm1, %v171_v29 }
  0xe6   :  { %399 = vmatmul.mubr.msk.f32.gmra.mrb[2].mxu1 %vm188_vm1, %v172_v31  ;;  %v174_v37 = vmax.f32 %v156_v32, 0.0 }
  0xe7   :  { %v173_v35 = vmax.f32 %v151_v34, 0.0  ;;  %v386_v36 = vpop.f32.mrb[6].mxu0 }
  0xe8   :  { %v166_v38 = vadd.f32 %v386_v36, %v331_v18  ;;  %v160_v39 = vpop.f32.mrb[7].mxu0 }
  0xe9   :  { %v161_v40 = vadd.f32 %v331_v18, %v160_v39  ;;  %401 = vmatprep.mubr.msk.f32.mxu1 %vm188_vm1, %v173_v35 }
  0xea   :  { %402 = vmatmul.mubr.msk.f32.gmra.mrb[4].mxu1 %vm188_vm1, %v174_v37  ;;  %v176_v42 = vmax.f32 %v166_v38, 0.0 }
  0xeb   :  { %v175_v41 = vmax.f32 %v161_v40, 0.0 }
  0xed   :  { %404 = vmatprep.mubr.msk.f32.mxu1 %vm188_vm1, %v175_v41 }
  0xee   :  { %405 = vmatmul.mubr.msk.f32.gmra.mrb[6].mxu1 %vm188_vm1, %v176_v42 }
 0x1b5   :  { %v397_v44 = vpop.f32.mrb[0].mxu1 }
 0x1b6   :  { %v285_v45 = vadd.f32 %v397_v44, %v340_v43  ;;  %v279_v46 = vpop.f32.mrb[1].mxu1 }
 0x1b7   :  { %v280_v47 = vadd.f32 %v340_v43, %v279_v46 }
 0x1b8   :  { %320 = vst.msk [vmem:[%s550_s5 + $0x8] sm:$0xff] %vm318_vm2, %v285_v45 }
 0x1b9   :  { %319 = vst.msk [vmem:[%s550_s5] sm:$0xff] %vm318_vm2, %v280_v47  ;;  %v400_v48 = vpop.f32.mrb[2].mxu1 }
 0x1ba   :  { %v295_v49 = vadd.f32 %v400_v48, %v340_v43  ;;  %v289_v50 = vpop.f32.mrb[3].mxu1 }
 0x1bb   :  { %v290_v51 = vadd.f32 %v340_v43, %v289_v50 }
 0x1bc   :  { %322 = vst.msk [vmem:[%s550_s5 + $0x18] sm:$0xff] %vm318_vm2, %v295_v49 }
 0x1bd   :  { %321 = vst.msk [vmem:[%s550_s5 + $0x10] sm:$0xff] %vm318_vm2, %v290_v51  ;;  %v403_v52 = vpop.f32.mrb[4].mxu1 }
 0x1be   :  { %v305_v53 = vadd.f32 %v403_v52, %v340_v43  ;;  %v299_v54 = vpop.f32.mrb[5].mxu1 }
 0x1bf   :  { %v300_v55 = vadd.f32 %v340_v43, %v299_v54 }
 0x1c0   :  { %324 = vst.msk [vmem:[%s550_s5 + $0x28] sm:$0xff] %vm318_vm2, %v305_v53 }
 0x1c1   :  { %323 = vst.msk [vmem:[%s550_s5 + $0x20] sm:$0xff] %vm318_vm2, %v300_v55  ;;  %v406_v56 = vpop.f32.mrb[6].mxu1 }
 0x1c2   :  { %v315_v57 = vadd.f32 %v406_v56, %v340_v43  ;;  %v309_v58 = vpop.f32.mrb[7].mxu1 }
 0x1c3   :  { %v310_v59 = vadd.f32 %v340_v43, %v309_v58 }
 0x1c4   :  { %326 = vst.msk [vmem:[%s550_s5 + $0x38] sm:$0xff] %vm318_vm2, %v315_v57 }
 0x1c5   :  { %325 = vst.msk [vmem:[%s550_s5 + $0x30] sm:$0xff] %vm318_vm2, %v310_v59 }

</bundles_post_ra>
